<compile_context>
chip_gen: v5e
topology: v5e:2x2
jax: 0.10.0
libtpu: 0.0.40
codegen_flags: <defaults>
</compile_context>

<pallas_src>
import functools

import jax
import jax.numpy as jnp
from jax import lax
from jax.experimental import pallas as pl
from jax.experimental.pallas import tpu as pltpu


def _round_up(x, m):
    return (x + m - 1) // m * m


def _vmem_limit(need_bytes):
    # 2x headroom over the estimated footprint, clamped to [32 MiB, 64 MiB] so the limit
    # is valid on v7x (64 MiB physical) while not artificially capping v5e/v6e.
    return int(min(max(2 * need_bytes, 32 * 1024 * 1024), 64 * 1024 * 1024))


# -----------------------------------------------------------------------------
# Kernel 1: fold the RNN input projection into the embedding table.
#   proj_table = embedding @ W_ih + (b_ih + b_hh)            (V_pad, H_pad)  f32
# One big, well-utilized MXU matmul instead of 2*T tiny ones on the serial path.
# -----------------------------------------------------------------------------
def proj_table_kernel(emb_ref,   # (v_tile, E_pad)  compute dtype
                      wih_ref,   # (E_pad, H_pad)   compute dtype
                      b_ref,     # (1, H_pad)       f32, pre-summed b_ih + b_hh
                      out_ref):  # (v_tile, H_pad)  f32
    out_ref[...] = (jnp.dot(emb_ref[...], wih_ref[...],
                            preferred_element_type=jnp.float32)
                    + b_ref[...]).astype(out_ref.dtype)


# -----------------------------------------------------------------------------
# Kernel 2: serial recurrence + classifier head, with in-kernel token gather.
#   grid = (T_pad // t_chunk,), sequential ("arbitrary").
#   h persists in VMEM scratch; the projected-input rows for chunk k+1 are DMA-gathered
#   from the HBM proj_table (one small row copy per (timestep, batch-row)) into the
#   other half of a double buffer while chunk k is being computed.
# -----------------------------------------------------------------------------
def rnn_recurrence_kernel(tok_ref,    # SMEM (T_pad * n_batch,) int32   [scalar prefetch]
                          proj_hbm,   # HBM  (V_pad, H_pad) f32         [memory_space=ANY]
                          whh_ref,    # VMEM (H_pad, H_pad)  compute dtype
                          wcls_ref,   # VMEM (H_pad, C_pad)  compute dtype
                          bcls_ref,   # VMEM (1, C_pad)      f32
                          out_ref,    # VMEM (B_pad, C_pad)  f32
                          xbuf,       # VMEM scratch (2, t_chunk, B_pad, H_pad) f32
                          h_ref,      # VMEM scratch (B_pad, H_pad) f32  (persistent h)
                          sem,        # DMA semaphores (2,)
                          *, t_chunk, n_batch, t_front_pad, unrolled):
    blk = pl.program_id(0)
    n_blk = pl.num_programs(0)
    slot = blk % 2
    n_rows = t_chunk * n_batch

    def gather_chunk(chunk, buf_slot):
        # One row DMA per (timestep, real batch row).  Rows b >= n_batch of xbuf are never
        # written; any garbage there stays confined to padded batch rows (no cross-row
        # mixing in the RNN/classifier) and is sliced off on the host.
        base = chunk * n_rows
        for i in range(t_chunk):
            for b in range(n_batch):
                tok = tok_ref[base + i * n_batch + b]
                pltpu.make_async_copy(
                    proj_hbm.at[pl.ds(tok, 1), :],
                    xbuf.at[buf_slot, i, pl.ds(b, 1), :],
                    sem.at[buf_slot]).start()

    @pl.when(blk == 0)
    def _init():
        h_ref[...] = jnp.zeros_like(h_ref)          # h_0 = 0 (PyTorch default)
        gather_chunk(0, 0)                          # prime slot 0

    @pl.when(blk + 1 < n_blk)
    def _prefetch():
        gather_chunk(blk + 1, 1 - slot)             # prefetch next chunk into other slot

    # Wait for the current chunk's gathered rows: all copies are equal-sized and landed
    # on sem[slot], so one matching-size wait per issued copy drains exactly this chunk.
    for _ in range(n_rows):
        pltpu.make_async_copy(proj_hbm.at[pl.ds(0, 1), :],
                              xbuf.at[slot, 0, pl.ds(0, 1), :],
                              sem.at[slot]).wait()

    mm_dtype = whh_ref.dtype                        # f32 or bf16 MXU operands
    h = h_ref[...]                                  # f32 state

    def step(i, h):
        x = xbuf[slot, i].astype(jnp.float32)       # (B_pad, H_pad)
        h_new = jnp.tanh(x + jnp.dot(h.astype(mm_dtype), whh_ref[...],
                                     preferred_element_type=jnp.float32))
        if t_front_pad:                             # front zero-padding: keep h = 0
            h_new = jnp.where(blk * t_chunk + i >= t_front_pad, h_new, h)
        return h_new

    if unrolled:                                    # small chunks: static unroll
        for i in range(t_chunk):
            h = step(i, h)
    else:                                           # large chunks: grouped-unroll fori
        h = lax.fori_loop(0, t_chunk, step, h, unroll=min(8, t_chunk))

    h_ref[...] = h

    @pl.when(blk == n_blk - 1)
    def _finalize():
        out_ref[...] = (jnp.dot(h.astype(mm_dtype), wcls_ref[...],
                                preferred_element_type=jnp.float32)
                        + bcls_ref[...]).astype(out_ref.dtype)


def rnn_classifier_forward(tokens, params, *, t_chunk=32, v_tile=1024,
                           compute_dtype=jnp.float32):
    """tokens: (B, T) int32.  Returns (B, num_classes) float32 logits."""
    emb_table = params["embedding"]          # (V, E)
    w_ih  = params["w_ih"]                   # (E, H)   input->hidden  (transposed vs torch)
    w_hh  = params["w_hh"]                   # (H, H)   hidden->hidden (transposed vs torch)
    b_ih  = params["b_ih"]                   # (1, H)
    b_hh  = params["b_hh"]                   # (1, H)
    w_cls = params["w_cls"]                  # (H, C)   classifier     (transposed vs torch)
    b_cls = params["b_cls"]                  # (1, C)

    B, T = tokens.shape
    V, E = emb_table.shape
    H = w_hh.shape[0]
    C = w_cls.shape[1]

    f32 = jnp.float32
    cdt = jnp.dtype(compute_dtype)
    isz = cdt.itemsize

    # Lane/sublane-dense padded sizes (zero padding is numerically exact).
    H_pad = _round_up(H, 128)
    C_pad = _round_up(C, 128)
    E_pad = _round_up(E, 128)
    B_pad = _round_up(B, 8)
    v_tile = min(v_tile, _round_up(V, 16))   # 16: keeps bf16 sublane tiling legal
    V_pad = _round_up(V, v_tile)

    # Sequence chunking: big chunks amortize per-grid-step overhead; arbitrary T is
    # handled by zero-padding at the FRONT (exact because h0 = 0 stays 0 through the
    # masked padded steps).
    t_chunk = max(1, min(t_chunk, _round_up(T, 8)))
    T_pad = _round_up(T, t_chunk)
    t_front_pad = T_pad - T
    n_chunks = T_pad // t_chunk
    unrolled = t_chunk <= 16

    emb_p   = jnp.zeros((V_pad, E_pad), cdt).at[:V, :E].set(emb_table.astype(cdt))
    w_ih_p  = jnp.zeros((E_pad, H_pad), cdt).at[:E, :H].set(w_ih.astype(cdt))
    b_p     = jnp.zeros((1, H_pad), f32).at[:, :H].set((b_ih + b_hh).astype(f32))
    w_hh_p  = jnp.zeros((H_pad, H_pad), cdt).at[:H, :H].set(w_hh.astype(cdt))
    w_cls_p = jnp.zeros((H_pad, C_pad), cdt).at[:H, :C].set(w_cls.astype(cdt))
    b_cls_p = jnp.zeros((1, C_pad), f32).at[:, :C].set(b_cls.astype(f32))

    # Time-major flat token stream (front padding uses token 0; those steps are masked
    # inside the kernel, so the gathered value never reaches h).
    tokens_flat = jnp.zeros((T_pad * B,), jnp.int32).at[t_front_pad * B:].set(
        tokens.astype(jnp.int32).T.reshape(-1))

    # ---- Kernel 1: proj_table = embedding @ W_ih + (b_ih + b_hh) ----
    # (If H_pad were >> E_pad, gathering E-wide embedding rows instead would cut the
    #  per-token gather traffic; at these shapes H_pad == E_pad so folding wins.)
    k1_need = (2 * v_tile * (E_pad * isz + H_pad * 4)
               + 2 * E_pad * H_pad * isz + 2 * H_pad * 4)
    proj_table = pl.pallas_call(
        proj_table_kernel,
        out_shape=jax.ShapeDtypeStruct((V_pad, H_pad), f32),
        grid=(V_pad // v_tile,),
        in_specs=[pl.BlockSpec((v_tile, E_pad), lambda i: (i, 0)),
                  pl.BlockSpec((E_pad, H_pad), lambda i: (0, 0)),
                  pl.BlockSpec((1, H_pad), lambda i: (0, 0))],
        out_specs=pl.BlockSpec((v_tile, H_pad), lambda i: (i, 0)),
        compiler_params=pltpu.CompilerParams(
            dimension_semantics=("parallel",),
            vmem_limit_bytes=_vmem_limit(k1_need)),
    )(emb_p, w_ih_p, b_p)

    # ---- Kernel 2: recurrence + classifier, with in-kernel double-buffered gather ----
    k2_need = (2 * t_chunk * B_pad * H_pad * 4            # xbuf double buffer
               + B_pad * H_pad * 4                         # h scratch
               + 2 * (H_pad * H_pad + H_pad * C_pad) * isz  # auto-piped weights (2 bufs)
               + 2 * C_pad * 4 + B_pad * C_pad * 4)
    kernel = functools.partial(rnn_recurrence_kernel, t_chunk=t_chunk, n_batch=B,
                               t_front_pad=t_front_pad, unrolled=unrolled)
    out = pl.pallas_call(
        kernel,
        out_shape=jax.ShapeDtypeStruct((B_pad, C_pad), f32),
        grid_spec=pltpu.PrefetchScalarGridSpec(
            num_scalar_prefetch=1,                         # tokens_flat -> SMEM
            grid=(n_chunks,),
            in_specs=[pl.BlockSpec(memory_space=pl.ANY),                    # proj_table (HBM)
                      pl.BlockSpec((H_pad, H_pad), lambda i, tok: (0, 0)),  # W_hh
                      pl.BlockSpec((H_pad, C_pad), lambda i, tok: (0, 0)),  # W_cls
                      pl.BlockSpec((1, C_pad), lambda i, tok: (0, 0))],     # b_cls
            out_specs=pl.BlockSpec((B_pad, C_pad), lambda i, tok: (0, 0)),
            scratch_shapes=[pltpu.VMEM((2, t_chunk, B_pad, H_pad), f32),    # gathered x
                            pltpu.VMEM((B_pad, H_pad), f32),                # persistent h
                            pltpu.SemaphoreType.DMA((2,))]),
        compiler_params=pltpu.CompilerParams(
            dimension_semantics=("arbitrary",),            # serial time axis
            vmem_limit_bytes=_vmem_limit(k2_need)),
    )(tokens_flat, proj_table, w_hh_p, w_cls_p, b_cls_p)

    return out[:B, :C]


def reference_forward(tokens, params):
    emb = params["embedding"][tokens]                # (B, T, E)
    B, T, _ = emb.shape
    H = params["w_hh"].shape[0]
    h = jnp.zeros((B, H), jnp.float32)
    for t in range(T):
        h = jnp.tanh(emb[:, t, :] @ params["w_ih"] + h @ params["w_hh"]
                     + params["b_ih"] + params["b_hh"])
    return h @ params["w_cls"] + params["b_cls"]


if __name__ == "__main__":
    # Small shapes consistent with the module's forward:
    # vocab=1000, embed_dim=100 (fixed by module), hidden=32, batch=2, classes=2.
    V, E, H, C = 1000, 100, 32, 2

    key = jax.random.PRNGKey(0)
    ks = jax.random.split(key, 9)
    params = {
        "embedding": jax.random.normal(ks[0], (V, E), jnp.float32) * 0.1,
        "w_ih":      jax.random.normal(ks[1], (E, H), jnp.float32) * 0.1,
        "w_hh":      jax.random.normal(ks[2], (H, H), jnp.float32) * 0.1,
        "b_ih":      jax.random.normal(ks[3], (1, H), jnp.float32) * 0.1,
        "b_hh":      jax.random.normal(ks[4], (1, H), jnp.float32) * 0.1,
        "w_cls":     jax.random.normal(ks[5], (H, C), jnp.float32) * 0.1,
        "b_cls":     jax.random.normal(ks[6], (1, C), jnp.float32) * 0.1,
    }
    tokens8  = jax.random.randint(ks[7], (2, 8), 0, V, dtype=jnp.int32)
    tokens64 = jax.random.randint(ks[8], (2, 64), 0, V, dtype=jnp.int32)

    def check(tokens, *, t_chunk, compute_dtype, atol, rtol, label):
        out = rnn_classifier_forward(tokens, params, t_chunk=t_chunk,
                                     compute_dtype=compute_dtype)
        out = jax.block_until_ready(out)
        ref = reference_forward(tokens, params)
        assert out.shape == ref.shape, (label, out.shape, ref.shape)
        err = float(jnp.max(jnp.abs(out - ref)))
        assert jnp.allclose(out, ref, atol=atol, rtol=rtol), \
            f"{label}: max abs err = {err}"

    # (a) two chunks: exercises priming, cross-chunk double-buffered gather, persistent h.
    check(tokens8, t_chunk=4, compute_dtype=jnp.float32, atol=1e-4, rtol=1e-4,
          label="f32 / t_chunk=4")
    # (b) T not divisible by t_chunk: front zero-padding + in-kernel masking path.
    check(tokens8, t_chunk=5, compute_dtype=jnp.float32, atol=1e-4, rtol=1e-4,
          label="f32 / front-pad")
    # (c) larger chunk: fori_loop (grouped unroll) timestep path.
    check(tokens64, t_chunk=32, compute_dtype=jnp.float32, atol=1e-4, rtol=1e-4,
          label="f32 / t_chunk=32 fori")
    # (d) bf16 MXU operands (v6e/v7x fast path), f32 state/accumulation -> looser tolerance.
    check(tokens8, t_chunk=4, compute_dtype=jnp.bfloat16, atol=5e-2, rtol=5e-2,
          label="bf16 operands")

    # TODO(synk): dropout (dr_rate) is inactive in the module's forward(); not implemented.
    print("KERNEL_OK")
</pallas_src>

<mosaic_0001>
module attributes {stable_mosaic.version = 11 : i64} {
  func.func @proj_table_kernel(%arg0: i32, %arg1: memref<1008x128xf32, #tpu.memory_space<vmem>>, %arg2: memref<128x128xf32, #tpu.memory_space<vmem>>, %arg3: memref<1x128xf32, #tpu.memory_space<vmem>>, %arg4: memref<1008x128xf32, #tpu.memory_space<vmem>>) attributes {dimension_semantics = [#tpu.dimension_semantics<parallel>], iteration_bounds = array<i64: 1>, scalar_prefetch = 0 : i64, scratch_operands = 0 : i64, tpu.core_type = #tpu.core_type<tc>, window_params = [{transform_indices = @transform_0, window_bounds = array<i64: 1008, 128>}, {pipeline_mode = #tpu.pipeline_mode<synchronous>, transform_indices = @transform_1, window_bounds = array<i64: 128, 128>}, {pipeline_mode = #tpu.pipeline_mode<synchronous>, transform_indices = @transform_2, window_bounds = array<i64: 1, 128>}, {transform_indices = @transform_3, window_bounds = array<i64: 1008, 128>}]} {
    %c0 = arith.constant 0 : index
    %c0_0 = arith.constant 0 : index
    %0 = vector.load %arg1[%c0, %c0_0] : memref<1008x128xf32, #tpu.memory_space<vmem>>, vector<1008x128xf32>
    %c0_1 = arith.constant 0 : index
    %c0_2 = arith.constant 0 : index
    %1 = vector.load %arg2[%c0_1, %c0_2] : memref<128x128xf32, #tpu.memory_space<vmem>>, vector<128x128xf32>
    %cst = arith.constant dense<0.000000e+00> : vector<1008x128xf32>
    %2 = tpu.matmul %0, %1, %cst {dimension_numbers = #tpu.dot_dimension_numbers<[1], [0], [0], [1], [0, 0, 1, 1], [], []>} : vector<1008x128xf32>, vector<128x128xf32>, vector<1008x128xf32> -> vector<1008x128xf32>
    %c0_3 = arith.constant 0 : index
    %c0_4 = arith.constant 0 : index
    %3 = vector.load %arg3[%c0_3, %c0_4] : memref<1x128xf32, #tpu.memory_space<vmem>>, vector<1x128xf32>
    %4 = vector.broadcast %3 : vector<1x128xf32> to vector<1008x128xf32>
    %5 = arith.addf %2, %4 : vector<1008x128xf32>
    %c0_5 = arith.constant 0 : index
    %c0_6 = arith.constant 0 : index
    %6 = vector.load %arg4[%c0_5, %c0_6] : memref<1008x128xf32, #tpu.memory_space<vmem>>, vector<1008x128xf32>
    tpu.vector_store %arg4[%c0_5, %c0_6], %5 {strides = array<i32>} : memref<1008x128xf32, #tpu.memory_space<vmem>>, vector<1008x128xf32>,
    return
  }
  func.func @transform_0(%arg0: i32) -> (i32, i32) {
    %c0_i32 = arith.constant 0 : i32
    %c0_i32_0 = arith.constant 0 : i32
    return %arg0, %c0_i32 : i32, i32
  }
  func.func @transform_1(%arg0: i32) -> (i32, i32) {
    %c0_i32 = arith.constant 0 : i32
    %c0_i32_0 = arith.constant 0 : i32
    %c0_i32_1 = arith.constant 0 : i32
    return %c0_i32, %c0_i32_0 : i32, i32
  }
  func.func @transform_2(%arg0: i32) -> (i32, i32) {
    %c0_i32 = arith.constant 0 : i32
    %c0_i32_0 = arith.constant 0 : i32
    %c0_i32_1 = arith.constant 0 : i32
    return %c0_i32, %c0_i32_0 : i32, i32
  }
  func.func @transform_3(%arg0: i32) -> (i32, i32) {
    %c0_i32 = arith.constant 0 : i32
    %c0_i32_0 = arith.constant 0 : i32
    return %arg0, %c0_i32 : i32, i32
  }
}

</mosaic_0001>

<bundles_post_ra>
// kernel: tpu_custom_call.1
= control target key start
LH: loop header
LB: loop body
LE: loop exit
PB: predicated region body
PF: predicated region fallthrough
CT: control target
= control target key end

     0   :  { %8 = vsyncpa [#allocation3], 0  ;;  %s1040_s0 = inlined_call_operand.hbm [shape: f32[1008,128], index: 0, kind: input, shape index: {}]   ;;  %s1041_s1 = inlined_call_operand.hbm [shape: f32[128,128], index: 1, kind: input, shape index: {}]   ;;  %s1042_s2 = inlined_call_operand.vmem [shape: f32[1,128], index: 2, kind: input, shape index: {}]   ;;  %s1043_s3 = inlined_call_operand.hbm [shape: f32[1008,128], index: 3, kind: output, shape index: {}]  }
   0x1   :  { %9 = vsyncpa [#allocation6], 0 }
   0x2   :  { %10 = vsyncpa [#allocation4], 0  ;;  %s15_s14 = sshll.u32 %s1040_s0, 4  ;;  %s866_s15 = smov [#allocation2]   ;;  %s16_s14 = int_to_ptr.hbm [resolvable:$true] %s15_s14 }
   0x3   :  { %s17_s16 = sshll.u32 %s866_s15, 4  ;;  %s28_s19 = sshll.u32 %s1041_s1, 4  ;;  %s18_s16 = int_to_ptr.vmem [resolvable:$true] %s17_s16  ;;  %s29_s19 = int_to_ptr.hbm [resolvable:$true] %s28_s19 }
   0x4   :  { %s867_s20 = smov 128   ;;  %s868_s21 = smov 8  }
   0x5   :  { %23 = dma.hbm_to_vmem [thread:$0]  %s16_s14, 16128, %s18_s16, [#allocation3], %s867_s20, %s867_s20, %s868_s21  }
   0x6   :  { %s869_s22 = smov [#allocation5]  }
   0x7   :  { %s30_s23 = sshll.u32 %s869_s22, 4  ;;  %s31_s23 = int_to_ptr.vmem [resolvable:$true] %s30_s23 }
   0x8   :  { %36 = dma.hbm_to_vmem [thread:$0]  %s29_s19, 2048, %s31_s23, [#allocation6], %s867_s20, %s867_s20, %s868_s21  }
   0x9   :  { %860 = dma.done.wait [#allocation3], 16128  }
   0xa   :  { %861 = vsyncadd [#allocation3], 4294951168 }
   0xb   :  { %862 = dma.done.wait [#allocation6], 2048  }
   0xc   :  { %863 = vsyncadd [#allocation6], 4294965248  ;;  %v188_v0 = vld [vmem:[#allocation5 + $0x78] sm:$0xff]  ;;  %v187_v1 = vld [vmem:[#allocation5 + $0x70] sm:$0xff]  ;;  %s720_s27 = sshll.u32 %s1043_s3, 4  ;;  %s721_s27 = int_to_ptr.hbm [resolvable:$true] %s720_s27 }
   0xd   :  { %735 = vmatpush.msra.mxu2 %v188_v0  ;;  %736 = vmatpush.msra.mxu3 %v188_v0  ;;  %v186_v2 = vld [vmem:[#allocation5 + $0x68] sm:$0xff]  ;;  %v185_v3 = vld [vmem:[#allocation5 + $0x60] sm:$0xff]  ;;  %v184_v4 = vld [vmem:[#allocation5 + $0x58] sm:$0xff] }
   0xe   :  { %193 = vmatpush.msra.mxu0 %v188_v0  ;;  %734 = vmatpush.msra.mxu1 %v188_v0  ;;  %v183_v5 = vld [vmem:[#allocation5 + $0x50] sm:$0xff]  ;;  %v182_v6 = vld [vmem:[#allocation5 + $0x48] sm:$0xff]  ;;  %v181_v7 = vld [vmem:[#allocation5 + $0x40] sm:$0xff] }
   0xf   :  { %738 = vmatpush.msra.mxu2 %v187_v1  ;;  %739 = vmatpush.msra.mxu3 %v187_v1  ;;  %v180_v8 = vld [vmem:[#allocation5 + $0x38] sm:$0xff]  ;;  %v179_v9 = vld [vmem:[#allocation5 + $0x30] sm:$0xff]  ;;  %v178_v10 = vld [vmem:[#allocation5 + $0x28] sm:$0xff] }
  0x10   :  { %194 = vmatpush.msra.mxu0 %v187_v1  ;;  %737 = vmatpush.msra.mxu1 %v187_v1  ;;  %v177_v11 = vld [vmem:[#allocation5 + $0x20] sm:$0xff]  ;;  %v176_v12 = vld [vmem:[#allocation5 + $0x18] sm:$0xff]  ;;  %v175_v13 = vld [vmem:[#allocation5 + $0x10] sm:$0xff] }
  0x11   :  { %741 = vmatpush.msra.mxu2 %v186_v2  ;;  %742 = vmatpush.msra.mxu3 %v186_v2  ;;  %v174_v14 = vld [vmem:[#allocation5 + $0x8] sm:$0xff]  ;;  %v173_v15 = vld [vmem:[#allocation5] sm:$0xff]  ;;  %v47_v18 = vld [vmem:[#allocation2] sm:$0xff] }
  0x12   :  { %195 = vmatpush.msra.mxu0 %v186_v2  ;;  %740 = vmatpush.msra.mxu1 %v186_v2  ;;  %v109_v16 = vld [vmem:[#allocation2 + $0x1f0] sm:$0xff]  ;;  %v78_v19 = vld [vmem:[#allocation2 + $0xf8] sm:$0xff]  ;;  %v48_v22 = vld [vmem:[#allocation2 + $0x8] sm:$0xff] }
  0x13   :  { %744 = vmatpush.msra.mxu2 %v185_v3  ;;  %745 = vmatpush.msra.mxu3 %v185_v3  ;;  %v141_v17 = vld [vmem:[#allocation2 + $0x2f0] sm:$0xff]  ;;  %v110_v20 = vld [vmem:[#allocation2 + $0x1f8] sm:$0xff]  ;;  %v79_v23 = vld [vmem:[#allocation2 + $0x100] sm:$0xff] }
  0x14   :  { %196 = vmatpush.msra.mxu0 %v185_v3  ;;  %743 = vmatpush.msra.mxu1 %v185_v3  ;;  %v142_v21 = vld [vmem:[#allocation2 + $0x2f8] sm:$0xff]  ;;  %v111_v24 = vld [vmem:[#allocation2 + $0x200] sm:$0xff]  ;;  %v49_v26 = vld [vmem:[#allocation2 + $0x10] sm:$0xff] }
  0x15   :  { %747 = vmatpush.msra.mxu2 %v184_v4  ;;  %748 = vmatpush.msra.mxu3 %v184_v4  ;;  %v143_v25 = vld [vmem:[#allocation2 + $0x300] sm:$0xff]  ;;  %v80_v27 = vld [vmem:[#allocation2 + $0x108] sm:$0xff]  ;;  %v50_v30 = vld [vmem:[#allocation2 + $0x18] sm:$0xff] }
  0x16   :  { %197 = vmatpush.msra.mxu0 %v184_v4  ;;  %746 = vmatpush.msra.mxu1 %v184_v4  ;;  %v112_v28 = vld [vmem:[#allocation2 + $0x208] sm:$0xff]  ;;  %v81_v31 = vld [vmem:[#allocation2 + $0x110] sm:$0xff]  ;;  %v51_v34 = vld [vmem:[#allocation2 + $0x20] sm:$0xff] }
  0x17   :  { %750 = vmatpush.msra.mxu2 %v183_v5  ;;  %751 = vmatpush.msra.mxu3 %v183_v5  ;;  %v144_v29 = vld [vmem:[#allocation2 + $0x308] sm:$0xff]  ;;  %v113_v32 = vld [vmem:[#allocation2 + $0x210] sm:$0xff]  ;;  %v82_v35 = vld [vmem:[#allocation2 + $0x118] sm:$0xff] }
  0x18   :  { %198 = vmatpush.msra.mxu0 %v183_v5  ;;  %749 = vmatpush.msra.mxu1 %v183_v5  ;;  %v145_v33 = vld [vmem:[#allocation2 + $0x310] sm:$0xff]  ;;  %v114_v36 = vld [vmem:[#allocation2 + $0x218] sm:$0xff]  ;;  %v52_v38 = vld [vmem:[#allocation2 + $0x28] sm:$0xff] }
  0x19   :  { %753 = vmatpush.msra.mxu2 %v182_v6  ;;  %754 = vmatpush.msra.mxu3 %v182_v6  ;;  %v146_v37 = vld [vmem:[#allocation2 + $0x318] sm:$0xff]  ;;  %v83_v39 = vld [vmem:[#allocation2 + $0x120] sm:$0xff]  ;;  %v53_v42 = vld [vmem:[#allocation2 + $0x30] sm:$0xff] }
  0x1a   :  { %199 = vmatpush.msra.mxu0 %v182_v6  ;;  %752 = vmatpush.msra.mxu1 %v182_v6  ;;  %v115_v40 = vld [vmem:[#allocation2 + $0x220] sm:$0xff]  ;;  %v84_v43 = vld [vmem:[#allocation2 + $0x128] sm:$0xff]  ;;  %v54_v46 = vld [vmem:[#allocation2 + $0x38] sm:$0xff] }
  0x1b   :  { %756 = vmatpush.msra.mxu2 %v181_v7  ;;  %757 = vmatpush.msra.mxu3 %v181_v7  ;;  %v147_v41 = vld [vmem:[#allocation2 + $0x320] sm:$0xff]  ;;  %v116_v44 = vld [vmem:[#allocation2 + $0x228] sm:$0xff]  ;;  %v85_v47 = vld [vmem:[#allocation2 + $0x130] sm:$0xff] }
  0x1c   :  { %200 = vmatpush.msra.mxu0 %v181_v7  ;;  %755 = vmatpush.msra.mxu1 %v181_v7  ;;  %v148_v45 = vld [vmem:[#allocation2 + $0x328] sm:$0xff]  ;;  %v117_v48 = vld [vmem:[#allocation2 + $0x230] sm:$0xff]  ;;  %v55_v50 = vld [vmem:[#allocation2 + $0x40] sm:$0xff] }
  0x1d   :  { %759 = vmatpush.msra.mxu2 %v180_v8  ;;  %760 = vmatpush.msra.mxu3 %v180_v8  ;;  %v149_v49 = vld [vmem:[#allocation2 + $0x330] sm:$0xff]  ;;  %v86_v51 = vld [vmem:[#allocation2 + $0x138] sm:$0xff]  ;;  %v56_v54 = vld [vmem:[#allocation2 + $0x48] sm:$0xff] }
  0x1e   :  { %201 = vmatpush.msra.mxu0 %v180_v8  ;;  %758 = vmatpush.msra.mxu1 %v180_v8  ;;  %v118_v52 = vld [vmem:[#allocation2 + $0x238] sm:$0xff]  ;;  %v87_v55 = vld [vmem:[#allocation2 + $0x140] sm:$0xff]  ;;  %v57_v58 = vld [vmem:[#allocation2 + $0x50] sm:$0xff] }
  0x1f   :  { %762 = vmatpush.msra.mxu2 %v179_v9  ;;  %763 = vmatpush.msra.mxu3 %v179_v9  ;;  %v150_v53 = vld [vmem:[#allocation2 + $0x338] sm:$0xff]  ;;  %v119_v56 = vld [vmem:[#allocation2 + $0x240] sm:$0xff]  ;;  %v88_v59 = vld [vmem:[#allocation2 + $0x148] sm:$0xff] }
  0x20   :  { %202 = vmatpush.msra.mxu0 %v179_v9  ;;  %761 = vmatpush.msra.mxu1 %v179_v9  ;;  %v151_v57 = vld [vmem:[#allocation2 + $0x340] sm:$0xff]  ;;  %v120_v60 = vld [vmem:[#allocation2 + $0x248] sm:$0xff]  ;;  %v58_v62 = vld [vmem:[#allocation2 + $0x58] sm:$0xff] }
  0x21   :  { %765 = vmatpush.msra.mxu2 %v178_v10  ;;  %766 = vmatpush.msra.mxu3 %v178_v10  ;;  %v152_v61 = vld [vmem:[#allocation2 + $0x348] sm:$0xff]  ;;  %v89_v63 = vld [vmem:[#allocation2 + $0x150] sm:$0xff]  ;;  %v59_v2 = vld [vmem:[#allocation2 + $0x60] sm:$0xff] }
  0x22   :  { %203 = vmatpush.msra.mxu0 %v178_v10  ;;  %764 = vmatpush.msra.mxu1 %v178_v10  ;;  %v121_v0 = vld [vmem:[#allocation2 + $0x250] sm:$0xff]  ;;  %v90_v3 = vld [vmem:[#allocation2 + $0x158] sm:$0xff]  ;;  %v60_v6 = vld [vmem:[#allocation2 + $0x68] sm:$0xff] }
  0x23   :  { %768 = vmatpush.msra.mxu2 %v177_v11  ;;  %769 = vmatpush.msra.mxu3 %v177_v11  ;;  %v153_v1 = vld [vmem:[#allocation2 + $0x350] sm:$0xff]  ;;  %v122_v4 = vld [vmem:[#allocation2 + $0x258] sm:$0xff]  ;;  %v91_v7 = vld [vmem:[#allocation2 + $0x160] sm:$0xff] }
  0x24   :  { %204 = vmatpush.msra.mxu0 %v177_v11  ;;  %767 = vmatpush.msra.mxu1 %v177_v11  ;;  %v154_v5 = vld [vmem:[#allocation2 + $0x358] sm:$0xff]  ;;  %v123_v8 = vld [vmem:[#allocation2 + $0x260] sm:$0xff]  ;;  %v61_v10 = vld [vmem:[#allocation2 + $0x70] sm:$0xff] }
  0x25   :  { %771 = vmatpush.msra.mxu2 %v176_v12  ;;  %772 = vmatpush.msra.mxu3 %v176_v12  ;;  %v155_v9 = vld [vmem:[#allocation2 + $0x360] sm:$0xff]  ;;  %v92_v11 = vld [vmem:[#allocation2 + $0x168] sm:$0xff] }
  0x26   :  { %205 = vmatpush.msra.mxu0 %v176_v12  ;;  %770 = vmatpush.msra.mxu1 %v176_v12  ;;  %v124_v12 = vld [vmem:[#allocation2 + $0x268] sm:$0xff] }
  0x27   :  { %774 = vmatpush.msra.mxu2 %v175_v13  ;;  %775 = vmatpush.msra.mxu3 %v175_v13 }
  0x28   :  { %206 = vmatpush.msra.mxu0 %v175_v13  ;;  %773 = vmatpush.msra.mxu1 %v175_v13  ;;  %v156_v13 = vld [vmem:[#allocation2 + $0x368] sm:$0xff] }
  0x29   :  { %777 = vmatpush.msra.mxu2 %v174_v14  ;;  %778 = vmatpush.msra.mxu3 %v174_v14 }
  0x2a   :  { %207 = vmatpush.msra.mxu0 %v174_v14  ;;  %776 = vmatpush.msra.mxu1 %v174_v14  ;;  %v62_v14 = vld [vmem:[#allocation2 + $0x78] sm:$0xff] }
  0x2b   :  { %780 = vmatpush.msra.mxu2 %v173_v15  ;;  %781 = vmatpush.msra.mxu3 %v173_v15 }
  0x2c   :  { %395 = vmatmul.f32.vlgmr.msra.gmra.mxu2 %v109_v16  ;;  %491 = vmatmul.f32.vlgmr.msra.gmra.mxu3 %v141_v17  ;;  %v125_v16 = vld [vmem:[#allocation2 + $0x270] sm:$0xff] }
  0x2d   :  { %208 = vmatpush.msra.mxu0 %v173_v15  ;;  %779 = vmatpush.msra.mxu1 %v173_v15  ;;  %v93_v15 = vld [vmem:[#allocation2 + $0x170] sm:$0xff] }
  0x2e   :  { %209 = vmatmul.f32.vlgmr.msra.gmra.mxu0 %v47_v18  ;;  %302 = vmatmul.f32.vlgmr.msra.gmra.mxu1 %v78_v19  ;;  %v157_v17 = vld [vmem:[#allocation2 + $0x370] sm:$0xff]  ;;  %v906_v18 = vld [vmem:[%s1042_s2] ss:$0 sm:$0xff]  ;;  %s870_s2 = smov [#allocation7]  }
  0x2f   :  { %s718_s24 = sshll.u32 %s870_s2, 4  ;;  %s719_s24 = int_to_ptr.vmem [resolvable:$true] %s718_s24 }
  0x34   :  { %398 = vmatmul.f32.gmra.mxu2 %v110_v20  ;;  %494 = vmatmul.f32.gmra.mxu3 %v142_v21  ;;  %v63_v21 = vld [vmem:[#allocation2 + $0x80] sm:$0xff] }
  0x36   :  { %212 = vmatmul.f32.gmra.mxu0 %v48_v22  ;;  %305 = vmatmul.f32.gmra.mxu1 %v79_v23  ;;  %v94_v22 = vld [vmem:[#allocation2 + $0x178] sm:$0xff] }
  0x3c   :  { %401 = vmatmul.f32.gmra.mxu2 %v111_v24  ;;  %497 = vmatmul.f32.gmra.mxu3 %v143_v25 }
  0x3e   :  { %215 = vmatmul.f32.gmra.mxu0 %v49_v26  ;;  %308 = vmatmul.f32.gmra.mxu1 %v80_v27 }
  0x44   :  { %404 = vmatmul.f32.gmra.mxu2 %v112_v28  ;;  %500 = vmatmul.f32.gmra.mxu3 %v144_v29  ;;  %v126_v29 = vld [vmem:[#allocation2 + $0x278] sm:$0xff] }
  0x46   :  { %218 = vmatmul.f32.gmra.mxu0 %v50_v30  ;;  %311 = vmatmul.f32.gmra.mxu1 %v81_v31  ;;  %v158_v30 = vld [vmem:[#allocation2 + $0x378] sm:$0xff] }
  0x4c   :  { %407 = vmatmul.f32.gmra.mxu2 %v113_v32  ;;  %503 = vmatmul.f32.gmra.mxu3 %v145_v33  ;;  %v64_v33 = vld [vmem:[#allocation2 + $0x88] sm:$0xff] }
  0x4e   :  { %221 = vmatmul.f32.gmra.mxu0 %v51_v34  ;;  %314 = vmatmul.f32.gmra.mxu1 %v82_v35  ;;  %v95_v34 = vld [vmem:[#allocation2 + $0x180] sm:$0xff] }
  0x54   :  { %410 = vmatmul.f32.gmra.mxu2 %v114_v36  ;;  %506 = vmatmul.f32.gmra.mxu3 %v146_v37 }
  0x56   :  { %224 = vmatmul.f32.gmra.mxu0 %v52_v38  ;;  %317 = vmatmul.f32.gmra.mxu1 %v83_v39 }
  0x5c   :  { %413 = vmatmul.f32.gmra.mxu2 %v115_v40  ;;  %509 = vmatmul.f32.gmra.mxu3 %v147_v41  ;;  %v127_v41 = vld [vmem:[#allocation2 + $0x280] sm:$0xff] }
  0x5e   :  { %227 = vmatmul.f32.gmra.mxu0 %v53_v42  ;;  %320 = vmatmul.f32.gmra.mxu1 %v84_v43  ;;  %v159_v42 = vld [vmem:[#allocation2 + $0x380] sm:$0xff] }
  0x64   :  { %416 = vmatmul.f32.gmra.mxu2 %v116_v44  ;;  %512 = vmatmul.f32.gmra.mxu3 %v148_v45  ;;  %v65_v45 = vld [vmem:[#allocation2 + $0x90] sm:$0xff] }
  0x66   :  { %230 = vmatmul.f32.gmra.mxu0 %v54_v46  ;;  %323 = vmatmul.f32.gmra.mxu1 %v85_v47  ;;  %v96_v46 = vld [vmem:[#allocation2 + $0x188] sm:$0xff] }
  0x6c   :  { %419 = vmatmul.f32.gmra.mxu2 %v117_v48  ;;  %515 = vmatmul.f32.gmra.mxu3 %v149_v49 }
  0x6e   :  { %233 = vmatmul.f32.gmra.mxu0 %v55_v50  ;;  %326 = vmatmul.f32.gmra.mxu1 %v86_v51 }
  0x74   :  { %422 = vmatmul.f32.gmra.mxu2 %v118_v52  ;;  %518 = vmatmul.f32.gmra.mxu3 %v150_v53  ;;  %v128_v53 = vld [vmem:[#allocation2 + $0x288] sm:$0xff] }
  0x76   :  { %236 = vmatmul.f32.gmra.mxu0 %v56_v54  ;;  %329 = vmatmul.f32.gmra.mxu1 %v87_v55  ;;  %v160_v54 = vld [vmem:[#allocation2 + $0x388] sm:$0xff] }
  0x7c   :  { %425 = vmatmul.f32.gmra.mxu2 %v119_v56  ;;  %521 = vmatmul.f32.gmra.mxu3 %v151_v57  ;;  %v66_v57 = vld [vmem:[#allocation2 + $0x98] sm:$0xff] }
  0x7e   :  { %239 = vmatmul.f32.gmra.mxu0 %v57_v58  ;;  %332 = vmatmul.f32.gmra.mxu1 %v88_v59  ;;  %v97_v58 = vld [vmem:[#allocation2 + $0x190] sm:$0xff] }
  0x84   :  { %428 = vmatmul.f32.gmra.mxu2 %v120_v60  ;;  %524 = vmatmul.f32.gmra.mxu3 %v152_v61 }
  0x86   :  { %242 = vmatmul.f32.gmra.mxu0 %v58_v62  ;;  %335 = vmatmul.f32.gmra.mxu1 %v89_v63 }
  0x8c   :  { %431 = vmatmul.f32.gmra.mxu2 %v121_v0  ;;  %527 = vmatmul.f32.gmra.mxu3 %v153_v1  ;;  %v129_v1 = vld [vmem:[#allocation2 + $0x290] sm:$0xff] }
  0x8e   :  { %245 = vmatmul.f32.gmra.mxu0 %v59_v2  ;;  %338 = vmatmul.f32.gmra.mxu1 %v90_v3  ;;  %v161_v2 = vld [vmem:[#allocation2 + $0x390] sm:$0xff] }
  0x94   :  { %434 = vmatmul.f32.gmra.mxu2 %v122_v4  ;;  %530 = vmatmul.f32.gmra.mxu3 %v154_v5  ;;  %v67_v5 = vld [vmem:[#allocation2 + $0xa0] sm:$0xff] }
  0x96   :  { %248 = vmatmul.f32.gmra.mxu0 %v60_v6  ;;  %341 = vmatmul.f32.gmra.mxu1 %v91_v7  ;;  %v98_v6 = vld [vmem:[#allocation2 + $0x198] sm:$0xff] }
  0x9c   :  { %437 = vmatmul.f32.gmra.mxu2 %v123_v8  ;;  %533 = vmatmul.f32.gmra.mxu3 %v155_v9 }
  0x9e   :  { %251 = vmatmul.f32.gmra.mxu0 %v61_v10  ;;  %344 = vmatmul.f32.gmra.mxu1 %v92_v11 }
  0xa4   :  { %440 = vmatmul.f32.gmra.mxu2 %v124_v12  ;;  %536 = vmatmul.f32.gmra.mxu3 %v156_v13  ;;  %v130_v13 = vld [vmem:[#allocation2 + $0x298] sm:$0xff] }
  0xa6   :  { %254 = vmatmul.f32.gmra.mxu0 %v62_v14  ;;  %347 = vmatmul.f32.gmra.mxu1 %v93_v15  ;;  %v162_v14 = vld [vmem:[#allocation2 + $0x398] sm:$0xff] }
  0xab   :  { %v210_v19 = vpop.f32.mrf.mxu0  ;;  %v303_v20 = vpop.f32.mrf.mxu1 }
  0xac   :  { %443 = vmatmul.f32.gmra.mxu2 %v125_v16  ;;  %539 = vmatmul.f32.gmra.mxu3 %v157_v17  ;;  %v211_v23 = vadd.f32 %v906_v18, %v210_v19  ;;  %v304_v24 = vadd.f32 %v906_v18, %v303_v20  ;;  %v68_v17 = vld [vmem:[#allocation2 + $0xa8] sm:$0xff]  ;;  %v99_v19 = vld [vmem:[#allocation2 + $0x1a0] sm:$0xff] }
  0xae   :  { %588 = vst [vmem:[#allocation7] sm:$0xff] %v211_v23  ;;  %257 = vmatmul.f32.gmra.mxu0 %v63_v21  ;;  %350 = vmatmul.f32.gmra.mxu1 %v94_v22 }
  0xaf   :  { %v396_v25 = vpop.f32.mrf.mxu2  ;;  %v492_v26 = vpop.f32.mrf.mxu3  ;;  %619 = vst [vmem:[#allocation7 + $0xf8] sm:$0xff] %v304_v24 }
  0xb0   :  { %v397_v27 = vadd.f32 %v906_v18, %v396_v25  ;;  %v493_v28 = vadd.f32 %v906_v18, %v492_v26  ;;  %v131_v26 = vld [vmem:[#allocation2 + $0x2a0] sm:$0xff] }
  0xb2   :  { %650 = vst [vmem:[#allocation7 + $0x1f0] sm:$0xff] %v397_v27  ;;  %v163_v27 = vld [vmem:[#allocation2 + $0x3a0] sm:$0xff] }
  0xb3   :  { %682 = vst [vmem:[#allocation7 + $0x2f0] sm:$0xff] %v493_v28  ;;  %v213_v31 = vpop.f32.mrf.mxu0  ;;  %v306_v32 = vpop.f32.mrf.mxu1 }
  0xb4   :  { %446 = vmatmul.f32.gmra.mxu2 %v126_v29  ;;  %542 = vmatmul.f32.gmra.mxu3 %v158_v30  ;;  %v214_v35 = vadd.f32 %v906_v18, %v213_v31  ;;  %v307_v36 = vadd.f32 %v906_v18, %v306_v32  ;;  %v69_v30 = vld [vmem:[#allocation2 + $0xb0] sm:$0xff]  ;;  %v100_v31 = vld [vmem:[#allocation2 + $0x1a8] sm:$0xff] }
  0xb6   :  { %589 = vst [vmem:[#allocation7 + $0x8] sm:$0xff] %v214_v35  ;;  %260 = vmatmul.f32.gmra.mxu0 %v64_v33  ;;  %353 = vmatmul.f32.gmra.mxu1 %v95_v34 }
  0xb7   :  { %v399_v37 = vpop.f32.mrf.mxu2  ;;  %v495_v38 = vpop.f32.mrf.mxu3  ;;  %620 = vst [vmem:[#allocation7 + $0x100] sm:$0xff] %v307_v36 }
  0xb8   :  { %v400_v39 = vadd.f32 %v906_v18, %v399_v37  ;;  %v496_v40 = vadd.f32 %v906_v18, %v495_v38  ;;  %v132_v38 = vld [vmem:[#allocation2 + $0x2a8] sm:$0xff] }
  0xba   :  { %651 = vst [vmem:[#allocation7 + $0x1f8] sm:$0xff] %v400_v39  ;;  %v164_v39 = vld [vmem:[#allocation2 + $0x3a8] sm:$0xff] }
  0xbb   :  { %683 = vst [vmem:[#allocation7 + $0x2f8] sm:$0xff] %v496_v40  ;;  %v216_v43 = vpop.f32.mrf.mxu0  ;;  %v309_v44 = vpop.f32.mrf.mxu1 }
  0xbc   :  { %449 = vmatmul.f32.gmra.mxu2 %v127_v41  ;;  %545 = vmatmul.f32.gmra.mxu3 %v159_v42  ;;  %v217_v47 = vadd.f32 %v906_v18, %v216_v43  ;;  %v310_v48 = vadd.f32 %v906_v18, %v309_v44  ;;  %v70_v42 = vld [vmem:[#allocation2 + $0xb8] sm:$0xff]  ;;  %v101_v43 = vld [vmem:[#allocation2 + $0x1b0] sm:$0xff] }
  0xbe   :  { %590 = vst [vmem:[#allocation7 + $0x10] sm:$0xff] %v217_v47  ;;  %263 = vmatmul.f32.gmra.mxu0 %v65_v45  ;;  %356 = vmatmul.f32.gmra.mxu1 %v96_v46 }
  0xbf   :  { %v402_v49 = vpop.f32.mrf.mxu2  ;;  %v498_v50 = vpop.f32.mrf.mxu3  ;;  %621 = vst [vmem:[#allocation7 + $0x108] sm:$0xff] %v310_v48 }
  0xc0   :  { %v403_v51 = vadd.f32 %v906_v18, %v402_v49  ;;  %v499_v52 = vadd.f32 %v906_v18, %v498_v50  ;;  %v133_v50 = vld [vmem:[#allocation2 + $0x2b0] sm:$0xff] }
  0xc2   :  { %652 = vst [vmem:[#allocation7 + $0x200] sm:$0xff] %v403_v51  ;;  %v165_v51 = vld [vmem:[#allocation2 + $0x3b0] sm:$0xff] }
  0xc3   :  { %684 = vst [vmem:[#allocation7 + $0x300] sm:$0xff] %v499_v52  ;;  %v219_v55 = vpop.f32.mrf.mxu0  ;;  %v312_v56 = vpop.f32.mrf.mxu1 }
  0xc4   :  { %452 = vmatmul.f32.gmra.mxu2 %v128_v53  ;;  %548 = vmatmul.f32.gmra.mxu3 %v160_v54  ;;  %v220_v59 = vadd.f32 %v906_v18, %v219_v55  ;;  %v313_v60 = vadd.f32 %v906_v18, %v312_v56  ;;  %v71_v54 = vld [vmem:[#allocation2 + $0xc0] sm:$0xff]  ;;  %v102_v55 = vld [vmem:[#allocation2 + $0x1b8] sm:$0xff] }
  0xc6   :  { %591 = vst [vmem:[#allocation7 + $0x18] sm:$0xff] %v220_v59  ;;  %266 = vmatmul.f32.gmra.mxu0 %v66_v57  ;;  %359 = vmatmul.f32.gmra.mxu1 %v97_v58 }
  0xc7   :  { %v405_v61 = vpop.f32.mrf.mxu2  ;;  %v501_v62 = vpop.f32.mrf.mxu3  ;;  %622 = vst [vmem:[#allocation7 + $0x110] sm:$0xff] %v313_v60 }
  0xc8   :  { %v406_v63 = vadd.f32 %v906_v18, %v405_v61  ;;  %v502_v0 = vadd.f32 %v906_v18, %v501_v62  ;;  %v134_v62 = vld [vmem:[#allocation2 + $0x2b8] sm:$0xff] }
  0xca   :  { %653 = vst [vmem:[#allocation7 + $0x208] sm:$0xff] %v406_v63  ;;  %v166_v63 = vld [vmem:[#allocation2 + $0x3b8] sm:$0xff] }
  0xcb   :  { %685 = vst [vmem:[#allocation7 + $0x308] sm:$0xff] %v502_v0  ;;  %v222_v3 = vpop.f32.mrf.mxu0  ;;  %v315_v4 = vpop.f32.mrf.mxu1 }
  0xcc   :  { %455 = vmatmul.f32.gmra.mxu2 %v129_v1  ;;  %551 = vmatmul.f32.gmra.mxu3 %v161_v2  ;;  %v223_v7 = vadd.f32 %v906_v18, %v222_v3  ;;  %v316_v8 = vadd.f32 %v906_v18, %v315_v4  ;;  %v72_v2 = vld [vmem:[#allocation2 + $0xc8] sm:$0xff]  ;;  %v103_v3 = vld [vmem:[#allocation2 + $0x1c0] sm:$0xff] }
  0xce   :  { %592 = vst [vmem:[#allocation7 + $0x20] sm:$0xff] %v223_v7  ;;  %269 = vmatmul.f32.gmra.mxu0 %v67_v5  ;;  %362 = vmatmul.f32.gmra.mxu1 %v98_v6 }
  0xcf   :  { %v408_v9 = vpop.f32.mrf.mxu2  ;;  %v504_v10 = vpop.f32.mrf.mxu3  ;;  %623 = vst [vmem:[#allocation7 + $0x118] sm:$0xff] %v316_v8 }
  0xd0   :  { %v409_v11 = vadd.f32 %v906_v18, %v408_v9  ;;  %v505_v12 = vadd.f32 %v906_v18, %v504_v10  ;;  %v135_v10 = vld [vmem:[#allocation2 + $0x2c0] sm:$0xff] }
  0xd2   :  { %654 = vst [vmem:[#allocation7 + $0x210] sm:$0xff] %v409_v11  ;;  %v167_v11 = vld [vmem:[#allocation2 + $0x3c0] sm:$0xff] }
  0xd3   :  { %686 = vst [vmem:[#allocation7 + $0x310] sm:$0xff] %v505_v12  ;;  %v225_v15 = vpop.f32.mrf.mxu0  ;;  %v318_v16 = vpop.f32.mrf.mxu1 }
  0xd4   :  { %458 = vmatmul.f32.gmra.mxu2 %v130_v13  ;;  %554 = vmatmul.f32.gmra.mxu3 %v162_v14  ;;  %v226_v20 = vadd.f32 %v906_v18, %v225_v15  ;;  %v319_v21 = vadd.f32 %v906_v18, %v318_v16  ;;  %v73_v14 = vld [vmem:[#allocation2 + $0xd0] sm:$0xff]  ;;  %v104_v15 = vld [vmem:[#allocation2 + $0x1c8] sm:$0xff] }
  0xd6   :  { %593 = vst [vmem:[#allocation7 + $0x28] sm:$0xff] %v226_v20  ;;  %272 = vmatmul.f32.gmra.mxu0 %v68_v17  ;;  %365 = vmatmul.f32.gmra.mxu1 %v99_v19 }
  0xd7   :  { %v411_v22 = vpop.f32.mrf.mxu2  ;;  %v507_v23 = vpop.f32.mrf.mxu3  ;;  %624 = vst [vmem:[#allocation7 + $0x120] sm:$0xff] %v319_v21 }
  0xd8   :  { %v412_v24 = vadd.f32 %v906_v18, %v411_v22  ;;  %v508_v25 = vadd.f32 %v906_v18, %v507_v23  ;;  %v136_v23 = vld [vmem:[#allocation2 + $0x2c8] sm:$0xff] }
  0xda   :  { %655 = vst [vmem:[#allocation7 + $0x218] sm:$0xff] %v412_v24  ;;  %v168_v24 = vld [vmem:[#allocation2 + $0x3c8] sm:$0xff] }
  0xdb   :  { %687 = vst [vmem:[#allocation7 + $0x318] sm:$0xff] %v508_v25  ;;  %v228_v28 = vpop.f32.mrf.mxu0  ;;  %v321_v29 = vpop.f32.mrf.mxu1 }
  0xdc   :  { %461 = vmatmul.f32.gmra.mxu2 %v131_v26  ;;  %557 = vmatmul.f32.gmra.mxu3 %v163_v27  ;;  %v229_v32 = vadd.f32 %v906_v18, %v228_v28  ;;  %v322_v33 = vadd.f32 %v906_v18, %v321_v29  ;;  %v74_v27 = vld [vmem:[#allocation2 + $0xd8] sm:$0xff]  ;;  %v105_v28 = vld [vmem:[#allocation2 + $0x1d0] sm:$0xff] }
  0xde   :  { %594 = vst [vmem:[#allocation7 + $0x30] sm:$0xff] %v229_v32  ;;  %275 = vmatmul.f32.gmra.mxu0 %v69_v30  ;;  %368 = vmatmul.f32.gmra.mxu1 %v100_v31 }
  0xdf   :  { %v414_v34 = vpop.f32.mrf.mxu2  ;;  %v510_v35 = vpop.f32.mrf.mxu3  ;;  %625 = vst [vmem:[#allocation7 + $0x128] sm:$0xff] %v322_v33 }
  0xe0   :  { %v415_v36 = vadd.f32 %v906_v18, %v414_v34  ;;  %v511_v37 = vadd.f32 %v906_v18, %v510_v35  ;;  %v137_v35 = vld [vmem:[#allocation2 + $0x2d0] sm:$0xff] }
  0xe2   :  { %656 = vst [vmem:[#allocation7 + $0x220] sm:$0xff] %v415_v36  ;;  %v169_v36 = vld [vmem:[#allocation2 + $0x3d0] sm:$0xff] }
  0xe3   :  { %688 = vst [vmem:[#allocation7 + $0x320] sm:$0xff] %v511_v37  ;;  %v231_v40 = vpop.f32.mrf.mxu0  ;;  %v324_v41 = vpop.f32.mrf.mxu1 }
  0xe4   :  { %464 = vmatmul.f32.gmra.mxu2 %v132_v38  ;;  %560 = vmatmul.f32.gmra.mxu3 %v164_v39  ;;  %v232_v44 = vadd.f32 %v906_v18, %v231_v40  ;;  %v325_v45 = vadd.f32 %v906_v18, %v324_v41  ;;  %v75_v39 = vld [vmem:[#allocation2 + $0xe0] sm:$0xff]  ;;  %v106_v40 = vld [vmem:[#allocation2 + $0x1d8] sm:$0xff] }
  0xe6   :  { %595 = vst [vmem:[#allocation7 + $0x38] sm:$0xff] %v232_v44  ;;  %278 = vmatmul.f32.gmra.mxu0 %v70_v42  ;;  %371 = vmatmul.f32.gmra.mxu1 %v101_v43 }
  0xe7   :  { %v417_v46 = vpop.f32.mrf.mxu2  ;;  %v513_v47 = vpop.f32.mrf.mxu3  ;;  %626 = vst [vmem:[#allocation7 + $0x130] sm:$0xff] %v325_v45 }
  0xe8   :  { %v418_v48 = vadd.f32 %v906_v18, %v417_v46  ;;  %v514_v49 = vadd.f32 %v906_v18, %v513_v47  ;;  %v138_v47 = vld [vmem:[#allocation2 + $0x2d8] sm:$0xff] }
  0xea   :  { %657 = vst [vmem:[#allocation7 + $0x228] sm:$0xff] %v418_v48  ;;  %v170_v48 = vld [vmem:[#allocation2 + $0x3d8] sm:$0xff] }
  0xeb   :  { %689 = vst [vmem:[#allocation7 + $0x328] sm:$0xff] %v514_v49  ;;  %v234_v52 = vpop.f32.mrf.mxu0  ;;  %v327_v53 = vpop.f32.mrf.mxu1 }
  0xec   :  { %467 = vmatmul.f32.gmra.mxu2 %v133_v50  ;;  %563 = vmatmul.f32.gmra.mxu3 %v165_v51  ;;  %v235_v56 = vadd.f32 %v906_v18, %v234_v52  ;;  %v328_v57 = vadd.f32 %v906_v18, %v327_v53  ;;  %v76_v51 = vld [vmem:[#allocation2 + $0xe8] sm:$0xff]  ;;  %v107_v52 = vld [vmem:[#allocation2 + $0x1e0] sm:$0xff] }
  0xee   :  { %596 = vst [vmem:[#allocation7 + $0x40] sm:$0xff] %v235_v56  ;;  %281 = vmatmul.f32.gmra.mxu0 %v71_v54  ;;  %374 = vmatmul.f32.gmra.mxu1 %v102_v55 }
  0xef   :  { %v420_v58 = vpop.f32.mrf.mxu2  ;;  %v516_v59 = vpop.f32.mrf.mxu3  ;;  %627 = vst [vmem:[#allocation7 + $0x138] sm:$0xff] %v328_v57 }
  0xf0   :  { %v421_v60 = vadd.f32 %v906_v18, %v420_v58  ;;  %v517_v61 = vadd.f32 %v906_v18, %v516_v59  ;;  %v139_v59 = vld [vmem:[#allocation2 + $0x2e0] sm:$0xff] }
  0xf2   :  { %658 = vst [vmem:[#allocation7 + $0x230] sm:$0xff] %v421_v60  ;;  %v171_v60 = vld [vmem:[#allocation2 + $0x3e0] sm:$0xff] }
  0xf3   :  { %690 = vst [vmem:[#allocation7 + $0x330] sm:$0xff] %v517_v61  ;;  %v237_v0 = vpop.f32.mrf.mxu0  ;;  %v330_v1 = vpop.f32.mrf.mxu1 }
  0xf4   :  { %470 = vmatmul.f32.gmra.mxu2 %v134_v62  ;;  %566 = vmatmul.f32.gmra.mxu3 %v166_v63  ;;  %v238_v4 = vadd.f32 %v906_v18, %v237_v0  ;;  %v331_v5 = vadd.f32 %v906_v18, %v330_v1  ;;  %v77_v63 = vld [vmem:[#allocation2 + $0xf0] sm:$0xff]  ;;  %v108_v0 = vld [vmem:[#allocation2 + $0x1e8] sm:$0xff] }
  0xf6   :  { %597 = vst [vmem:[#allocation7 + $0x48] sm:$0xff] %v238_v4  ;;  %284 = vmatmul.f32.gmra.mxu0 %v72_v2  ;;  %377 = vmatmul.f32.gmra.mxu1 %v103_v3 }
  0xf7   :  { %v423_v6 = vpop.f32.mrf.mxu2  ;;  %v519_v7 = vpop.f32.mrf.mxu3  ;;  %628 = vst [vmem:[#allocation7 + $0x140] sm:$0xff] %v331_v5 }
  0xf8   :  { %v424_v8 = vadd.f32 %v906_v18, %v423_v6  ;;  %v520_v9 = vadd.f32 %v906_v18, %v519_v7  ;;  %v140_v7 = vld [vmem:[#allocation2 + $0x2e8] sm:$0xff] }
  0xfa   :  { %659 = vst [vmem:[#allocation7 + $0x238] sm:$0xff] %v424_v8  ;;  %v172_v8 = vld [vmem:[#allocation2 + $0x3e8] sm:$0xff] }
  0xfb   :  { %691 = vst [vmem:[#allocation7 + $0x338] sm:$0xff] %v520_v9  ;;  %v240_v12 = vpop.f32.mrf.mxu0  ;;  %v333_v13 = vpop.f32.mrf.mxu1 }
  0xfc   :  { %473 = vmatmul.f32.gmra.mxu2 %v135_v10  ;;  %569 = vmatmul.f32.gmra.mxu3 %v167_v11  ;;  %v241_v16 = vadd.f32 %v906_v18, %v240_v12  ;;  %v334_v17 = vadd.f32 %v906_v18, %v333_v13 }
  0xfe   :  { %598 = vst [vmem:[#allocation7 + $0x50] sm:$0xff] %v241_v16  ;;  %287 = vmatmul.f32.gmra.mxu0 %v73_v14  ;;  %380 = vmatmul.f32.gmra.mxu1 %v104_v15 }
  0xff   :  { %v426_v19 = vpop.f32.mrf.mxu2  ;;  %v522_v20 = vpop.f32.mrf.mxu3  ;;  %629 = vst [vmem:[#allocation7 + $0x148] sm:$0xff] %v334_v17 }
 0x100   :  { %v427_v21 = vadd.f32 %v906_v18, %v426_v19  ;;  %v523_v22 = vadd.f32 %v906_v18, %v522_v20 }
 0x102   :  { %660 = vst [vmem:[#allocation7 + $0x240] sm:$0xff] %v427_v21 }
 0x103   :  { %692 = vst [vmem:[#allocation7 + $0x340] sm:$0xff] %v523_v22  ;;  %v243_v25 = vpop.f32.mrf.mxu0  ;;  %v336_v26 = vpop.f32.mrf.mxu1 }
 0x104   :  { %476 = vmatmul.f32.gmra.mxu2 %v136_v23  ;;  %572 = vmatmul.f32.gmra.mxu3 %v168_v24  ;;  %v244_v29 = vadd.f32 %v906_v18, %v243_v25  ;;  %v337_v30 = vadd.f32 %v906_v18, %v336_v26 }
 0x106   :  { %599 = vst [vmem:[#allocation7 + $0x58] sm:$0xff] %v244_v29  ;;  %290 = vmatmul.f32.gmra.mxu0 %v74_v27  ;;  %383 = vmatmul.f32.gmra.mxu1 %v105_v28 }
 0x107   :  { %v429_v31 = vpop.f32.mrf.mxu2  ;;  %v525_v32 = vpop.f32.mrf.mxu3  ;;  %630 = vst [vmem:[#allocation7 + $0x150] sm:$0xff] %v337_v30 }
 0x108   :  { %v430_v33 = vadd.f32 %v906_v18, %v429_v31  ;;  %v526_v34 = vadd.f32 %v906_v18, %v525_v32 }
 0x10a   :  { %661 = vst [vmem:[#allocation7 + $0x248] sm:$0xff] %v430_v33 }
 0x10b   :  { %693 = vst [vmem:[#allocation7 + $0x348] sm:$0xff] %v526_v34  ;;  %v246_v37 = vpop.f32.mrf.mxu0  ;;  %v339_v38 = vpop.f32.mrf.mxu1 }
 0x10c   :  { %479 = vmatmul.f32.gmra.mxu2 %v137_v35  ;;  %575 = vmatmul.f32.gmra.mxu3 %v169_v36  ;;  %v247_v41 = vadd.f32 %v906_v18, %v246_v37  ;;  %v340_v42 = vadd.f32 %v906_v18, %v339_v38 }
 0x10e   :  { %600 = vst [vmem:[#allocation7 + $0x60] sm:$0xff] %v247_v41  ;;  %293 = vmatmul.f32.gmra.mxu0 %v75_v39  ;;  %386 = vmatmul.f32.gmra.mxu1 %v106_v40 }
 0x10f   :  { %v432_v43 = vpop.f32.mrf.mxu2  ;;  %v528_v44 = vpop.f32.mrf.mxu3  ;;  %631 = vst [vmem:[#allocation7 + $0x158] sm:$0xff] %v340_v42 }
 0x110   :  { %v433_v45 = vadd.f32 %v906_v18, %v432_v43  ;;  %v529_v46 = vadd.f32 %v906_v18, %v528_v44 }
 0x112   :  { %662 = vst [vmem:[#allocation7 + $0x250] sm:$0xff] %v433_v45 }
 0x113   :  { %694 = vst [vmem:[#allocation7 + $0x350] sm:$0xff] %v529_v46  ;;  %v249_v49 = vpop.f32.mrf.mxu0  ;;  %v342_v50 = vpop.f32.mrf.mxu1 }
 0x114   :  { %482 = vmatmul.f32.gmra.mxu2 %v138_v47  ;;  %578 = vmatmul.f32.gmra.mxu3 %v170_v48  ;;  %v250_v53 = vadd.f32 %v906_v18, %v249_v49  ;;  %v343_v54 = vadd.f32 %v906_v18, %v342_v50 }
 0x116   :  { %601 = vst [vmem:[#allocation7 + $0x68] sm:$0xff] %v250_v53  ;;  %296 = vmatmul.f32.gmra.mxu0 %v76_v51  ;;  %389 = vmatmul.f32.gmra.mxu1 %v107_v52 }
 0x117   :  { %v435_v55 = vpop.f32.mrf.mxu2  ;;  %v531_v56 = vpop.f32.mrf.mxu3  ;;  %632 = vst [vmem:[#allocation7 + $0x160] sm:$0xff] %v343_v54 }
 0x118   :  { %v436_v57 = vadd.f32 %v906_v18, %v435_v55  ;;  %v532_v58 = vadd.f32 %v906_v18, %v531_v56 }
 0x11a   :  { %663 = vst [vmem:[#allocation7 + $0x258] sm:$0xff] %v436_v57 }
 0x11b   :  { %695 = vst [vmem:[#allocation7 + $0x358] sm:$0xff] %v532_v58  ;;  %v252_v61 = vpop.f32.mrf.mxu0  ;;  %v345_v62 = vpop.f32.mrf.mxu1 }
 0x11c   :  { %485 = vmatmul.f32.gmra.mxu2 %v139_v59  ;;  %581 = vmatmul.f32.gmra.mxu3 %v171_v60  ;;  %v253_v1 = vadd.f32 %v906_v18, %v252_v61  ;;  %v346_v2 = vadd.f32 %v906_v18, %v345_v62 }
 0x11e   :  { %602 = vst [vmem:[#allocation7 + $0x70] sm:$0xff] %v253_v1  ;;  %299 = vmatmul.f32.gmra.mxu0 %v77_v63  ;;  %392 = vmatmul.f32.gmra.mxu1 %v108_v0 }
 0x11f   :  { %v438_v3 = vpop.f32.mrf.mxu2  ;;  %v534_v4 = vpop.f32.mrf.mxu3  ;;  %633 = vst [vmem:[#allocation7 + $0x168] sm:$0xff] %v346_v2 }
 0x120   :  { %v439_v5 = vadd.f32 %v906_v18, %v438_v3  ;;  %v535_v6 = vadd.f32 %v906_v18, %v534_v4 }
 0x122   :  { %664 = vst [vmem:[#allocation7 + $0x260] sm:$0xff] %v439_v5 }
 0x123   :  { %696 = vst [vmem:[#allocation7 + $0x360] sm:$0xff] %v535_v6  ;;  %v255_v9 = vpop.f32.mrf.mxu0  ;;  %v348_v10 = vpop.f32.mrf.mxu1 }
 0x124   :  { %488 = vmatmul.f32.gmra.mxu2 %v140_v7  ;;  %584 = vmatmul.f32.gmra.mxu3 %v172_v8  ;;  %v256_v11 = vadd.f32 %v906_v18, %v255_v9  ;;  %v349_v12 = vadd.f32 %v906_v18, %v348_v10 }
 0x126   :  { %603 = vst [vmem:[#allocation7 + $0x78] sm:$0xff] %v256_v11 }
 0x127   :  { %v441_v13 = vpop.f32.mrf.mxu2  ;;  %v537_v14 = vpop.f32.mrf.mxu3  ;;  %634 = vst [vmem:[#allocation7 + $0x170] sm:$0xff] %v349_v12 }
 0x128   :  { %v442_v15 = vadd.f32 %v906_v18, %v441_v13  ;;  %v538_v16 = vadd.f32 %v906_v18, %v537_v14 }
 0x12a   :  { %665 = vst [vmem:[#allocation7 + $0x268] sm:$0xff] %v442_v15 }
 0x12b   :  { %697 = vst [vmem:[#allocation7 + $0x368] sm:$0xff] %v538_v16  ;;  %v258_v17 = vpop.f32.mrf.mxu0  ;;  %v351_v19 = vpop.f32.mrf.mxu1 }
 0x12c   :  { %v259_v20 = vadd.f32 %v906_v18, %v258_v17  ;;  %v352_v21 = vadd.f32 %v906_v18, %v351_v19 }
 0x12e   :  { %604 = vst [vmem:[#allocation7 + $0x80] sm:$0xff] %v259_v20 }
 0x12f   :  { %v444_v22 = vpop.f32.mrf.mxu2  ;;  %v540_v23 = vpop.f32.mrf.mxu3  ;;  %635 = vst [vmem:[#allocation7 + $0x178] sm:$0xff] %v352_v21 }
 0x130   :  { %v445_v24 = vadd.f32 %v906_v18, %v444_v22  ;;  %v541_v25 = vadd.f32 %v906_v18, %v540_v23 }
 0x132   :  { %666 = vst [vmem:[#allocation7 + $0x270] sm:$0xff] %v445_v24 }
 0x133   :  { %698 = vst [vmem:[#allocation7 + $0x370] sm:$0xff] %v541_v25  ;;  %v261_v26 = vpop.f32.mrf.mxu0  ;;  %v354_v27 = vpop.f32.mrf.mxu1 }
 0x134   :  { %v262_v28 = vadd.f32 %v906_v18, %v261_v26  ;;  %v355_v29 = vadd.f32 %v906_v18, %v354_v27 }
 0x136   :  { %605 = vst [vmem:[#allocation7 + $0x88] sm:$0xff] %v262_v28 }
 0x137   :  { %v447_v30 = vpop.f32.mrf.mxu2  ;;  %v543_v31 = vpop.f32.mrf.mxu3  ;;  %636 = vst [vmem:[#allocation7 + $0x180] sm:$0xff] %v355_v29 }
 0x138   :  { %v448_v32 = vadd.f32 %v906_v18, %v447_v30  ;;  %v544_v33 = vadd.f32 %v906_v18, %v543_v31 }
 0x13a   :  { %667 = vst [vmem:[#allocation7 + $0x278] sm:$0xff] %v448_v32 }
 0x13b   :  { %699 = vst [vmem:[#allocation7 + $0x378] sm:$0xff] %v544_v33  ;;  %v264_v34 = vpop.f32.mrf.mxu0  ;;  %v357_v35 = vpop.f32.mrf.mxu1 }
 0x13c   :  { %v265_v36 = vadd.f32 %v906_v18, %v264_v34  ;;  %v358_v37 = vadd.f32 %v906_v18, %v357_v35 }
 0x13e   :  { %606 = vst [vmem:[#allocation7 + $0x90] sm:$0xff] %v265_v36 }
 0x13f   :  { %v450_v38 = vpop.f32.mrf.mxu2  ;;  %v546_v39 = vpop.f32.mrf.mxu3  ;;  %637 = vst [vmem:[#allocation7 + $0x188] sm:$0xff] %v358_v37 }
 0x140   :  { %v451_v40 = vadd.f32 %v906_v18, %v450_v38  ;;  %v547_v41 = vadd.f32 %v906_v18, %v546_v39 }
 0x142   :  { %668 = vst [vmem:[#allocation7 + $0x280] sm:$0xff] %v451_v40 }
 0x143   :  { %700 = vst [vmem:[#allocation7 + $0x380] sm:$0xff] %v547_v41  ;;  %v267_v42 = vpop.f32.mrf.mxu0  ;;  %v360_v43 = vpop.f32.mrf.mxu1 }
 0x144   :  { %v268_v44 = vadd.f32 %v906_v18, %v267_v42  ;;  %v361_v45 = vadd.f32 %v906_v18, %v360_v43 }
 0x146   :  { %607 = vst [vmem:[#allocation7 + $0x98] sm:$0xff] %v268_v44 }
 0x147   :  { %v453_v46 = vpop.f32.mrf.mxu2  ;;  %v549_v47 = vpop.f32.mrf.mxu3  ;;  %638 = vst [vmem:[#allocation7 + $0x190] sm:$0xff] %v361_v45 }
 0x148   :  { %v454_v48 = vadd.f32 %v906_v18, %v453_v46  ;;  %v550_v49 = vadd.f32 %v906_v18, %v549_v47 }
 0x14a   :  { %669 = vst [vmem:[#allocation7 + $0x288] sm:$0xff] %v454_v48 }
 0x14b   :  { %701 = vst [vmem:[#allocation7 + $0x388] sm:$0xff] %v550_v49  ;;  %v270_v50 = vpop.f32.mrf.mxu0  ;;  %v363_v51 = vpop.f32.mrf.mxu1 }
 0x14c   :  { %v271_v52 = vadd.f32 %v906_v18, %v270_v50  ;;  %v364_v53 = vadd.f32 %v906_v18, %v363_v51 }
 0x14e   :  { %608 = vst [vmem:[#allocation7 + $0xa0] sm:$0xff] %v271_v52 }
 0x14f   :  { %v456_v54 = vpop.f32.mrf.mxu2  ;;  %v552_v55 = vpop.f32.mrf.mxu3  ;;  %639 = vst [vmem:[#allocation7 + $0x198] sm:$0xff] %v364_v53 }
 0x150   :  { %v457_v56 = vadd.f32 %v906_v18, %v456_v54  ;;  %v553_v57 = vadd.f32 %v906_v18, %v552_v55 }
 0x152   :  { %670 = vst [vmem:[#allocation7 + $0x290] sm:$0xff] %v457_v56 }
 0x153   :  { %702 = vst [vmem:[#allocation7 + $0x390] sm:$0xff] %v553_v57  ;;  %v273_v58 = vpop.f32.mrf.mxu0  ;;  %v366_v59 = vpop.f32.mrf.mxu1 }
 0x154   :  { %v274_v60 = vadd.f32 %v906_v18, %v273_v58  ;;  %v367_v61 = vadd.f32 %v906_v18, %v366_v59 }
 0x156   :  { %609 = vst [vmem:[#allocation7 + $0xa8] sm:$0xff] %v274_v60 }
 0x157   :  { %v459_v62 = vpop.f32.mrf.mxu2  ;;  %v555_v63 = vpop.f32.mrf.mxu3  ;;  %640 = vst [vmem:[#allocation7 + $0x1a0] sm:$0xff] %v367_v61 }
 0x158   :  { %v460_v0 = vadd.f32 %v906_v18, %v459_v62  ;;  %v556_v1 = vadd.f32 %v906_v18, %v555_v63 }
 0x15a   :  { %671 = vst [vmem:[#allocation7 + $0x298] sm:$0xff] %v460_v0 }
 0x15b   :  { %703 = vst [vmem:[#allocation7 + $0x398] sm:$0xff] %v556_v1  ;;  %v276_v2 = vpop.f32.mrf.mxu0  ;;  %v369_v3 = vpop.f32.mrf.mxu1 }
 0x15c   :  { %v277_v4 = vadd.f32 %v906_v18, %v276_v2  ;;  %v370_v5 = vadd.f32 %v906_v18, %v369_v3 }
 0x15e   :  { %610 = vst [vmem:[#allocation7 + $0xb0] sm:$0xff] %v277_v4 }
 0x15f   :  { %v462_v6 = vpop.f32.mrf.mxu2  ;;  %v558_v7 = vpop.f32.mrf.mxu3  ;;  %641 = vst [vmem:[#allocation7 + $0x1a8] sm:$0xff] %v370_v5 }
 0x160   :  { %v463_v8 = vadd.f32 %v906_v18, %v462_v6  ;;  %v559_v9 = vadd.f32 %v906_v18, %v558_v7 }
 0x162   :  { %672 = vst [vmem:[#allocation7 + $0x2a0] sm:$0xff] %v463_v8 }
 0x163   :  { %704 = vst [vmem:[#allocation7 + $0x3a0] sm:$0xff] %v559_v9  ;;  %v279_v10 = vpop.f32.mrf.mxu0  ;;  %v372_v11 = vpop.f32.mrf.mxu1 }
 0x164   :  { %v280_v12 = vadd.f32 %v906_v18, %v279_v10  ;;  %v373_v13 = vadd.f32 %v906_v18, %v372_v11 }
 0x166   :  { %611 = vst [vmem:[#allocation7 + $0xb8] sm:$0xff] %v280_v12 }
 0x167   :  { %v465_v14 = vpop.f32.mrf.mxu2  ;;  %v561_v15 = vpop.f32.mrf.mxu3  ;;  %642 = vst [vmem:[#allocation7 + $0x1b0] sm:$0xff] %v373_v13 }
 0x168   :  { %v466_v16 = vadd.f32 %v906_v18, %v465_v14  ;;  %v562_v17 = vadd.f32 %v906_v18, %v561_v15 }
 0x16a   :  { %673 = vst [vmem:[#allocation7 + $0x2a8] sm:$0xff] %v466_v16 }
 0x16b   :  { %705 = vst [vmem:[#allocation7 + $0x3a8] sm:$0xff] %v562_v17  ;;  %v282_v19 = vpop.f32.mrf.mxu0  ;;  %v375_v20 = vpop.f32.mrf.mxu1 }
 0x16c   :  { %v283_v21 = vadd.f32 %v906_v18, %v282_v19  ;;  %v376_v22 = vadd.f32 %v906_v18, %v375_v20 }
 0x16e   :  { %612 = vst [vmem:[#allocation7 + $0xc0] sm:$0xff] %v283_v21 }
 0x16f   :  { %v468_v23 = vpop.f32.mrf.mxu2  ;;  %v564_v24 = vpop.f32.mrf.mxu3  ;;  %643 = vst [vmem:[#allocation7 + $0x1b8] sm:$0xff] %v376_v22 }
 0x170   :  { %v469_v25 = vadd.f32 %v906_v18, %v468_v23  ;;  %v565_v26 = vadd.f32 %v906_v18, %v564_v24 }
 0x172   :  { %674 = vst [vmem:[#allocation7 + $0x2b0] sm:$0xff] %v469_v25 }
 0x173   :  { %706 = vst [vmem:[#allocation7 + $0x3b0] sm:$0xff] %v565_v26  ;;  %v285_v27 = vpop.f32.mrf.mxu0  ;;  %v378_v28 = vpop.f32.mrf.mxu1 }
 0x174   :  { %v286_v29 = vadd.f32 %v906_v18, %v285_v27  ;;  %v379_v30 = vadd.f32 %v906_v18, %v378_v28 }
 0x176   :  { %613 = vst [vmem:[#allocation7 + $0xc8] sm:$0xff] %v286_v29 }
 0x177   :  { %v471_v31 = vpop.f32.mrf.mxu2  ;;  %v567_v32 = vpop.f32.mrf.mxu3  ;;  %644 = vst [vmem:[#allocation7 + $0x1c0] sm:$0xff] %v379_v30 }
 0x178   :  { %v472_v33 = vadd.f32 %v906_v18, %v471_v31  ;;  %v568_v34 = vadd.f32 %v906_v18, %v567_v32 }
 0x17a   :  { %675 = vst [vmem:[#allocation7 + $0x2b8] sm:$0xff] %v472_v33 }
 0x17b   :  { %707 = vst [vmem:[#allocation7 + $0x3b8] sm:$0xff] %v568_v34  ;;  %v288_v35 = vpop.f32.mrf.mxu0  ;;  %v381_v36 = vpop.f32.mrf.mxu1 }
 0x17c   :  { %v289_v37 = vadd.f32 %v906_v18, %v288_v35  ;;  %v382_v38 = vadd.f32 %v906_v18, %v381_v36 }
 0x17e   :  { %614 = vst [vmem:[#allocation7 + $0xd0] sm:$0xff] %v289_v37 }
 0x17f   :  { %v474_v39 = vpop.f32.mrf.mxu2  ;;  %v570_v40 = vpop.f32.mrf.mxu3  ;;  %645 = vst [vmem:[#allocation7 + $0x1c8] sm:$0xff] %v382_v38 }
 0x180   :  { %v475_v41 = vadd.f32 %v906_v18, %v474_v39  ;;  %v571_v42 = vadd.f32 %v906_v18, %v570_v40 }
 0x182   :  { %676 = vst [vmem:[#allocation7 + $0x2c0] sm:$0xff] %v475_v41 }
 0x183   :  { %708 = vst [vmem:[#allocation7 + $0x3c0] sm:$0xff] %v571_v42  ;;  %v291_v43 = vpop.f32.mrf.mxu0  ;;  %v384_v44 = vpop.f32.mrf.mxu1 }
 0x184   :  { %v292_v45 = vadd.f32 %v906_v18, %v291_v43  ;;  %v385_v46 = vadd.f32 %v906_v18, %v384_v44 }
 0x186   :  { %615 = vst [vmem:[#allocation7 + $0xd8] sm:$0xff] %v292_v45 }
 0x187   :  { %v477_v47 = vpop.f32.mrf.mxu2  ;;  %v573_v48 = vpop.f32.mrf.mxu3  ;;  %646 = vst [vmem:[#allocation7 + $0x1d0] sm:$0xff] %v385_v46 }
 0x188   :  { %v478_v49 = vadd.f32 %v906_v18, %v477_v47  ;;  %v574_v50 = vadd.f32 %v906_v18, %v573_v48 }
 0x18a   :  { %677 = vst [vmem:[#allocation7 + $0x2c8] sm:$0xff] %v478_v49 }
 0x18b   :  { %709 = vst [vmem:[#allocation7 + $0x3c8] sm:$0xff] %v574_v50  ;;  %v294_v51 = vpop.f32.mrf.mxu0  ;;  %v387_v52 = vpop.f32.mrf.mxu1 }
 0x18c   :  { %v295_v53 = vadd.f32 %v906_v18, %v294_v51  ;;  %v388_v54 = vadd.f32 %v906_v18, %v387_v52 }
 0x18e   :  { %616 = vst [vmem:[#allocation7 + $0xe0] sm:$0xff] %v295_v53 }
 0x18f   :  { %v480_v55 = vpop.f32.mrf.mxu2  ;;  %v576_v56 = vpop.f32.mrf.mxu3  ;;  %647 = vst [vmem:[#allocation7 + $0x1d8] sm:$0xff] %v388_v54 }
 0x190   :  { %v481_v57 = vadd.f32 %v906_v18, %v480_v55  ;;  %v577_v58 = vadd.f32 %v906_v18, %v576_v56 }
 0x192   :  { %678 = vst [vmem:[#allocation7 + $0x2d0] sm:$0xff] %v481_v57 }
 0x193   :  { %710 = vst [vmem:[#allocation7 + $0x3d0] sm:$0xff] %v577_v58  ;;  %v297_v59 = vpop.f32.mrf.mxu0  ;;  %v390_v60 = vpop.f32.mrf.mxu1 }
 0x194   :  { %v298_v61 = vadd.f32 %v906_v18, %v297_v59  ;;  %v391_v62 = vadd.f32 %v906_v18, %v390_v60 }
 0x196   :  { %617 = vst [vmem:[#allocation7 + $0xe8] sm:$0xff] %v298_v61 }
 0x197   :  { %v483_v63 = vpop.f32.mrf.mxu2  ;;  %v579_v0 = vpop.f32.mrf.mxu3  ;;  %648 = vst [vmem:[#allocation7 + $0x1e0] sm:$0xff] %v391_v62 }
 0x198   :  { %v484_v1 = vadd.f32 %v906_v18, %v483_v63  ;;  %v580_v2 = vadd.f32 %v906_v18, %v579_v0 }
 0x19a   :  { %679 = vst [vmem:[#allocation7 + $0x2d8] sm:$0xff] %v484_v1 }
 0x19b   :  { %711 = vst [vmem:[#allocation7 + $0x3d8] sm:$0xff] %v580_v2  ;;  %v300_v3 = vpop.f32.mrf.mxu0  ;;  %v393_v4 = vpop.f32.mrf.mxu1 }
 0x19c   :  { %v301_v5 = vadd.f32 %v906_v18, %v300_v3  ;;  %v394_v6 = vadd.f32 %v906_v18, %v393_v4 }
 0x19e   :  { %618 = vst [vmem:[#allocation7 + $0xf0] sm:$0xff] %v301_v5 }
 0x19f   :  { %v486_v7 = vpop.f32.mrf.mxu2  ;;  %v582_v8 = vpop.f32.mrf.mxu3  ;;  %649 = vst [vmem:[#allocation7 + $0x1e8] sm:$0xff] %v394_v6 }
 0x1a0   :  { %v487_v9 = vadd.f32 %v906_v18, %v486_v7  ;;  %v583_v10 = vadd.f32 %v906_v18, %v582_v8 }
 0x1a2   :  { %680 = vst [vmem:[#allocation7 + $0x2e0] sm:$0xff] %v487_v9 }
 0x1a3   :  { %712 = vst [vmem:[#allocation7 + $0x3e0] sm:$0xff] %v583_v10 }
 0x1a7   :  { %v489_v11 = vpop.f32.mrf.mxu2  ;;  %v585_v12 = vpop.f32.mrf.mxu3 }
 0x1a8   :  { %v490_v13 = vadd.f32 %v906_v18, %v489_v11  ;;  %v586_v14 = vadd.f32 %v906_v18, %v585_v12 }
 0x1aa   :  { %681 = vst [vmem:[#allocation7 + $0x2e8] sm:$0xff] %v490_v13 }
 0x1ab   :  { %713 = vst [vmem:[#allocation7 + $0x3e8] sm:$0xff] %v586_v14 }
 0x1ac   :  { %726 = dma.vmem_to_hbm [thread:$0]  %s719_s24, 16128, %s721_s27, [#allocation4], %s867_s20, %s867_s20, %s868_s21  }
 0x1ad   :  { %864 = dma.done.wait [#allocation4], 16128  }
 0x1ae   :  { %865 = vsyncadd [#allocation4], 4294951168 }
 0x1af   :  { %731 = vsyncpa [#allocation3], 1 }
 0x1b0   :  { %732 = vsyncpa [#allocation6], 1 }
 0x1b1   :  { %733 = vsyncpa [#allocation4], 1 }

</bundles_post_ra>
